<compile_context>
chip_gen: v7x
topology: tpu7x:2x2x1
jax: 0.10.0
libtpu: 0.0.40
codegen_flags: <defaults>
</compile_context>

<pallas_src>
import functools

import jax
import jax.numpy as jnp
from jax.experimental import pallas as pl
from jax.experimental.pallas import tpu as pltpu


def _pointwise_kernel(x_ref, w0_ref, b0_ref, w1_ref, b1_ref, w2_ref, b2_ref,
                      o_ref, *, leak, conv0_dtype):
    # LeakyReLU: max-form (mul+max, 2 VALU ops) is valid for 0 <= leak <= 1;
    # fall back to the where-form otherwise.  Static python branch at trace time.
    if 0.0 <= leak <= 1.0:
        act = lambda v: jnp.maximum(v, v * leak)
    else:
        act = lambda v: jnp.where(v > 0, v, v * leak)

    # conv0: 1 -> 2ch.  K=1 rank-1 expansion -> pure VPU broadcast mul-add.
    # Runs in `conv0_dtype` (bf16 on v6e/v7x halves VALU/ld-st work on the
    # dominant (2ch, TM) slab; f32 on v5e).  w0/b0 arrive pre-cast.
    x = x_ref[...].astype(conv0_dtype)                 # (1, TM) cheap cast
    h0 = w0_ref[...] * x + b0_ref[...]                 # (2ch, TM)
    h0 = act(h0)

    # conv1: 2ch -> ch.  The only real matmul; bf16 operands, f32 accumulate.
    # w1 is pre-cast bf16 on the host; the h0 cast is a no-op if conv0 was bf16.
    h1 = jnp.dot(w1_ref[...], h0.astype(jnp.bfloat16),
                 preferred_element_type=jnp.float32) + b1_ref[...]
    h1 = act(h1)                                       # (ch, TM) f32

    # conv2: ch -> 1.  M=1 reduction -> VPU multiply + cross-sublane (XLU) sum.
    h2 = jnp.sum(w2_ref[...] * h1, axis=0, keepdims=True) + b2_ref[0, 0]
    o_ref[...] = h2.astype(o_ref.dtype)


def _conv0_wants_bf16():
    """bf16 elementwise path only on chips with a bf16-native VALU (v6e/v7x)."""
    try:
        kind = jax.devices()[0].device_kind.lower()
    except Exception:
        return True
    return not any(v in kind for v in ("v2", "v3", "v4", "v5"))


def neural_pointwise_net(x, params, *, leak=0.2, tile_m=8192, conv0_bf16=None):
    """x: (N, 1, H, W) float32. Returns (N, 1, H, W) float32."""
    w0, b0, w1, b1, w2, b2 = params
    n, c_in, h, w = x.shape
    assert c_in == 1
    if conv0_bf16 is None:
        conv0_bf16 = _conv0_wants_bf16()
    conv0_dtype = jnp.bfloat16 if conv0_bf16 else jnp.float32

    p = n * h * w
    p_al = pl.cdiv(p, 128) * 128                      # lane alignment

    # Tile selection: big lane-dense tiles amortize the ~0.35us per-step cost.
    # If the slab is smaller than 2 requested tiles, shrink to ~half the slab
    # so the grid keeps 2 (even) steps for the two v7x TensorCores (negligible
    # cost on single-TC v5e/v6e).  The slab is then padded (with zeros) up to a
    # tile_m multiple so the last grid step never computes on garbage.
    tile_m = max(128, min(int(tile_m), 1 << 20)) // 128 * 128
    if p_al < 2 * tile_m:
        tile_m = 128 if p_al < 256 else pl.cdiv(pl.cdiv(p_al, 2), 128) * 128
    p_pad = pl.cdiv(p_al, tile_m) * tile_m            # tile_m | p_pad

    x_flat = x.reshape(1, p)
    if p_pad != p:
        x_flat = jnp.pad(x_flat, ((0, 0), (0, p_pad - p)))

    two_ch = w0.shape[0]
    ch = w1.shape[0]

    # Hoisted host-side casts / reshapes (no per-grid-step recasting).
    w0_c = w0.astype(conv0_dtype)                     # (2ch, 1)
    b0_c = b0.astype(conv0_dtype)                     # (2ch, 1)
    w1_bf = w1.astype(jnp.bfloat16)                   # (ch, 2ch)
    w2_col = w2.reshape(ch, 1)                        # column layout for VPU mul
    b2_s = b2.reshape(1, 1)                           # scalar, lives in SMEM

    grid = (p_pad // tile_m,)
    kernel = functools.partial(_pointwise_kernel, leak=leak,
                               conv0_dtype=conv0_dtype)

    # Compute-bound: ~2*(ch*2ch) FLOP vs 8 B HBM per pixel -> default double
    # buffering suffices; the estimate helps XLA schedule around the call.
    flops = 2 * (two_ch + ch * two_ch + ch) * p_pad
    bytes_accessed = 8 * p_pad + 2 * ch * two_ch + 8 * (two_ch + ch + 1)
    cost = pl.CostEstimate(flops=flops, transcendentals=0,
                           bytes_accessed=bytes_accessed)

    # VMEM budget: intermediates cost ~(2ch*itemsize + 4*ch) B per pixel; keep
    # headroom but never ask for more than v7x's 64 MiB.
    item0 = 2 if conv0_bf16 else 4
    est_tile_bytes = tile_m * (2 * two_ch * item0 + 4 * ch + 32)
    vmem_limit = int(min(64 * 2**20, max(32 * 2**20, 2 * est_tile_bytes)))

    out_flat = pl.pallas_call(
        kernel,
        out_shape=jax.ShapeDtypeStruct((1, p_pad), x.dtype),
        grid=grid,
        in_specs=[
            pl.BlockSpec((1, tile_m), lambda i: (0, i)),        # x tile
            pl.BlockSpec((two_ch, 1), lambda i: (0, 0)),        # w0 (2ch,1)
            pl.BlockSpec((two_ch, 1), lambda i: (0, 0)),        # b0 (2ch,1)
            pl.BlockSpec((ch, two_ch), lambda i: (0, 0)),       # w1 (ch,2ch) bf16
            pl.BlockSpec((ch, 1), lambda i: (0, 0)),            # b1 (ch,1) f32
            pl.BlockSpec((ch, 1), lambda i: (0, 0)),            # w2 (ch,1) f32
            pl.BlockSpec(memory_space=pltpu.MemorySpace.SMEM),  # b2 (1,1) scalar
        ],
        out_specs=pl.BlockSpec((1, tile_m), lambda i: (0, i)),
        compiler_params=pltpu.CompilerParams(
            dimension_semantics=("parallel",),
            vmem_limit_bytes=vmem_limit),
        cost_estimate=cost,
    )(x_flat, w0_c, b0_c, w1_bf, b1, w2_col, b2_s)

    if p_pad != p:
        out_flat = out_flat[:, :p]
    return out_flat.reshape(n, 1, h, w)


def init_params(key, ch=64):
    """Deterministic init mimicking PyTorch Conv2d default (uniform +-1/sqrt(fan_in))."""
    k0, k1, k2, k3, k4, k5 = jax.random.split(key, 6)

    def u(k, shape, fan_in):
        bound = 1.0 / jnp.sqrt(float(fan_in))
        return jax.random.uniform(k, shape, jnp.float32, -bound, bound)

    two_ch = 2 * ch
    # 1x1 conv weights stored as (C_out, C_in); biases as (C_out, 1)
    w0 = u(k0, (two_ch, 1), 1)
    b0 = u(k1, (two_ch, 1), 1)
    w1 = u(k2, (ch, two_ch), two_ch)
    b1 = u(k3, (ch, 1), two_ch)
    w2 = u(k4, (1, ch), ch)
    b2 = u(k5, (1, 1), ch)
    return (w0, b0, w1, b1, w2, b2)


def reference(x, params, leak=0.2):
    """Pure-JAX f32 reference of the PyTorch forward pass (for sanity check)."""
    w0, b0, w1, b1, w2, b2 = params
    n, _, h, w = x.shape
    xf = x.reshape(1, -1)
    h0 = w0 @ xf + b0
    h0 = jnp.where(h0 > 0, h0, leak * h0)
    h1 = w1 @ h0 + b1
    h1 = jnp.where(h1 > 0, h1, leak * h1)
    h2 = w2 @ h1 + b2
    return h2.reshape(n, 1, h, w)


if __name__ == "__main__":
    ch = 64
    leak = 0.2
    key = jax.random.PRNGKey(0)
    kx, kp = jax.random.split(key)

    # small input consistent with the module: N=2, C=1, H=W=16
    x = jax.random.normal(kx, (2, 1, 16, 16), jnp.float32)
    params = init_params(kp, ch=ch)

    out = neural_pointwise_net(x, params, leak=leak)
    out = jax.block_until_ready(out)

    ref = reference(x, params, leak=leak)
    assert out.shape == (2, 1, 16, 16)
    # conv0 (on v6e/v7x) and conv1 run in bf16 -> tolerance loosened vs. f32 ref
    assert jnp.allclose(out, ref, atol=5e-2, rtol=5e-2)

    print("KERNEL_OK")
</pallas_src>

<mosaic_0001>
module attributes {stable_mosaic.version = 11 : i64} {
  func.func @_pointwise_kernel(%arg0: i32, %arg1: memref<1x256xf32, #tpu.memory_space<vmem>>, %arg2: memref<128x1xbf16, #tpu.memory_space<vmem>>, %arg3: memref<128x1xbf16, #tpu.memory_space<vmem>>, %arg4: memref<64x128xbf16, #tpu.memory_space<vmem>>, %arg5: memref<64x1xf32, #tpu.memory_space<vmem>>, %arg6: memref<64x1xf32, #tpu.memory_space<vmem>>, %arg7: memref<1x1xf32, #tpu.memory_space<smem>>, %arg8: memref<1x256xf32, #tpu.memory_space<vmem>>) attributes {dimension_semantics = [#tpu.dimension_semantics<parallel>], iteration_bounds = array<i64: 2>, scalar_prefetch = 0 : i64, scratch_operands = 0 : i64, tpu.core_type = #tpu.core_type<tc>, window_params = [{transform_indices = @transform_0, window_bounds = array<i64: 1, 256>}, {pipeline_mode = #tpu.pipeline_mode<synchronous>, transform_indices = @transform_1, window_bounds = array<i64: 128, 1>}, {pipeline_mode = #tpu.pipeline_mode<synchronous>, transform_indices = @transform_2, window_bounds = array<i64: 128, 1>}, {pipeline_mode = #tpu.pipeline_mode<synchronous>, transform_indices = @transform_3, window_bounds = array<i64: 64, 128>}, {pipeline_mode = #tpu.pipeline_mode<synchronous>, transform_indices = @transform_4, window_bounds = array<i64: 64, 1>}, {pipeline_mode = #tpu.pipeline_mode<synchronous>, transform_indices = @transform_5, window_bounds = array<i64: 64, 1>}, {transform_indices = @transform_6, window_bounds = array<i64: 1, 1>}, {transform_indices = @transform_7, window_bounds = array<i64: 1, 256>}]} {
    %c0 = arith.constant 0 : index
    %c0_0 = arith.constant 0 : index
    %0 = vector.load %arg1[%c0, %c0_0] : memref<1x256xf32, #tpu.memory_space<vmem>>, vector<1x256xf32>
    %1 = arith.truncf %0 : vector<1x256xf32> to vector<1x256xbf16>
    %c0_1 = arith.constant 0 : index
    %c0_2 = arith.constant 0 : index
    %2 = vector.load %arg2[%c0_1, %c0_2] : memref<128x1xbf16, #tpu.memory_space<vmem>>, vector<128x1xbf16>
    %3 = vector.broadcast %2 : vector<128x1xbf16> to vector<128x256xbf16>
    %4 = vector.broadcast %1 : vector<1x256xbf16> to vector<128x256xbf16>
    %5 = arith.mulf %3, %4 : vector<128x256xbf16>
    %c0_3 = arith.constant 0 : index
    %c0_4 = arith.constant 0 : index
    %6 = vector.load %arg3[%c0_3, %c0_4] : memref<128x1xbf16, #tpu.memory_space<vmem>>, vector<128x1xbf16>
    %7 = vector.broadcast %6 : vector<128x1xbf16> to vector<128x256xbf16>
    %8 = arith.addf %5, %7 : vector<128x256xbf16>
    %cst = arith.constant 2.001950e-01 : bf16
    %9 = vector.broadcast %cst : bf16 to vector<128x256xbf16>
    %10 = arith.mulf %8, %9 : vector<128x256xbf16>
    %11 = arith.maximumf %8, %10 : vector<128x256xbf16>
    %c0_5 = arith.constant 0 : index
    %c0_6 = arith.constant 0 : index
    %12 = vector.load %arg4[%c0_5, %c0_6] : memref<64x128xbf16, #tpu.memory_space<vmem>>, vector<64x128xbf16>
    %cst_7 = arith.constant dense<0.000000e+00> : vector<64x256xf32>
    %13 = tpu.matmul %12, %11, %cst_7 {dimension_numbers = #tpu.dot_dimension_numbers<[1], [0], [0], [1], [0, 0, 1, 1], [], []>} : vector<64x128xbf16>, vector<128x256xbf16>, vector<64x256xf32> -> vector<64x256xf32>
    %c0_8 = arith.constant 0 : index
    %c0_9 = arith.constant 0 : index
    %14 = vector.load %arg5[%c0_8, %c0_9] : memref<64x1xf32, #tpu.memory_space<vmem>>, vector<64x1xf32>
    %15 = vector.broadcast %14 : vector<64x1xf32> to vector<64x256xf32>
    %16 = arith.addf %13, %15 : vector<64x256xf32>
    %cst_10 = arith.constant 2.000000e-01 : f32
    %17 = vector.broadcast %cst_10 : f32 to vector<64x256xf32>
    %18 = arith.mulf %16, %17 : vector<64x256xf32>
    %19 = arith.maximumf %16, %18 : vector<64x256xf32>
    %c0_11 = arith.constant 0 : index
    %c0_12 = arith.constant 0 : index
    %20 = vector.load %arg6[%c0_11, %c0_12] : memref<64x1xf32, #tpu.memory_space<vmem>>, vector<64x1xf32>
    %21 = vector.broadcast %20 : vector<64x1xf32> to vector<64x256xf32>
    %22 = arith.mulf %21, %19 : vector<64x256xf32>
    %cst_13 = arith.constant dense<0.000000e+00> : vector<256xf32>
    %23 = vector.multi_reduction <add>, %22, %cst_13 [0] : vector<64x256xf32> to vector<256xf32>
    %24 = vector.shape_cast %23 : vector<256xf32> to vector<1x256xf32>
    %c0_14 = arith.constant 0 : index
    %c0_15 = arith.constant 0 : index
    %25 = memref.load %arg7[%c0_14, %c0_15] : memref<1x1xf32, #tpu.memory_space<smem>>
    %26 = vector.broadcast %25 : f32 to vector<1x256xf32>
    %27 = arith.addf %24, %26 : vector<1x256xf32>
    %c0_16 = arith.constant 0 : index
    %c0_17 = arith.constant 0 : index
    %28 = vector.load %arg8[%c0_16, %c0_17] : memref<1x256xf32, #tpu.memory_space<vmem>>, vector<1x256xf32>
    tpu.vector_store %arg8[%c0_16, %c0_17], %27 {strides = array<i32>} : memref<1x256xf32, #tpu.memory_space<vmem>>, vector<1x256xf32>,
    return
  }
  func.func @transform_0(%arg0: i32) -> (i32, i32) {
    %c0_i32 = arith.constant 0 : i32
    %c0_i32_0 = arith.constant 0 : i32
    return %c0_i32, %arg0 : i32, i32
  }
  func.func @transform_1(%arg0: i32) -> (i32, i32) {
    %c0_i32 = arith.constant 0 : i32
    %c0_i32_0 = arith.constant 0 : i32
    %c0_i32_1 = arith.constant 0 : i32
    return %c0_i32, %c0_i32_0 : i32, i32
  }
  func.func @transform_2(%arg0: i32) -> (i32, i32) {
    %c0_i32 = arith.constant 0 : i32
    %c0_i32_0 = arith.constant 0 : i32
    %c0_i32_1 = arith.constant 0 : i32
    return %c0_i32, %c0_i32_0 : i32, i32
  }
  func.func @transform_3(%arg0: i32) -> (i32, i32) {
    %c0_i32 = arith.constant 0 : i32
    %c0_i32_0 = arith.constant 0 : i32
    %c0_i32_1 = arith.constant 0 : i32
    return %c0_i32, %c0_i32_0 : i32, i32
  }
  func.func @transform_4(%arg0: i32) -> (i32, i32) {
    %c0_i32 = arith.constant 0 : i32
    %c0_i32_0 = arith.constant 0 : i32
    %c0_i32_1 = arith.constant 0 : i32
    return %c0_i32, %c0_i32_0 : i32, i32
  }
  func.func @transform_5(%arg0: i32) -> (i32, i32) {
    %c0_i32 = arith.constant 0 : i32
    %c0_i32_0 = arith.constant 0 : i32
    %c0_i32_1 = arith.constant 0 : i32
    return %c0_i32, %c0_i32_0 : i32, i32
  }
  func.func @transform_6(%arg0: i32) -> (i32, i32) {
    %c0_i32 = arith.constant 0 : i32
    %c0_i32_0 = arith.constant 0 : i32
    %c0_i32_1 = arith.constant 0 : i32
    return %c0_i32, %c0_i32_0 : i32, i32
  }
  func.func @transform_7(%arg0: i32) -> (i32, i32) {
    %c0_i32 = arith.constant 0 : i32
    %c0_i32_0 = arith.constant 0 : i32
    return %c0_i32, %arg0 : i32, i32
  }
}

</mosaic_0001>

<bundles_post_ra>
// kernel: tpu_custom_call.1
= control target key start
LH: loop header
LB: loop body
LE: loop exit
PB: predicated region body
PF: predicated region fallthrough
CT: control target
= control target key end

     0   :  { %s1780_s0 = inlined_call_operand.vmem [shape: f32[1,512], index: 0, kind: input, shape index: {}]   ;;  %s1781_s1 = inlined_call_operand.vmem [shape: bf16[128,1], index: 1, kind: input, shape index: {}]   ;;  %s1782_s2 = inlined_call_operand.vmem [shape: bf16[128,1], index: 2, kind: input, shape index: {}]   ;;  %s1783_s3 = inlined_call_operand.vmem [shape: bf16[64,128], index: 3, kind: input, shape index: {}]   ;;  %s1784_s4 = inlined_call_operand.vmem [shape: f32[64,1], index: 4, kind: input, shape index: {}]   ;;  %s1785_s5 = inlined_call_operand.vmem [shape: f32[64,1], index: 5, kind: input, shape index: {}]   ;;  %s1786_s6 = inlined_call_operand.<no memory space> [shape: f32[1,1], index: 6, kind: input, shape index: {}]   ;;  %s1787_s7 = inlined_call_operand.hbm [shape: f32[1,512], index: 7, kind: output, shape index: {}]  }
   0x1   :  { %12 = sst [smem:[#allocation2]] %s1786_s6 }
   0x2   :  { %13 = vsyncpa [#allocation4], 0 }
   0x3   :  { %15 = vsyncpa [#allocation4 + $0x1], 0  ;;  %s1455_s26 = smov 0   ;;  %s1457_s27 = smov 0  }
   0x4   :  { %s1459_s28 = smov 0   ;;  %s1461_s29 = smov 0  }
   0x5 LB: > { %s1476_s6 = sadd.s32 4294967295, %s1406_s29   ;;  %s1247_s30 = sadd.s32 4294967294, %s1406_s29   ;;  %s1406_s29 = sphi %s1461_s29, %s1793_s29   ;;  %s1402_s28 = sphi %s1459_s28, %s1792_s28   ;;  %s1398_s27 = sphi %s1457_s27, %s1791_s27   ;;  %s1394_s26 = sphi %s1455_s26, %s1790_s26  }
   0x6   : > { %s1480_s8 = sadd.s32 1, %s1406_s29   ;;  %s180_s9 = sadd.s32 1, %s1402_s28 }
   0x7   : > { %s177_s10 = ssub.s32 %s1406_s29, %s1480_s8  ;;  %p190_p0 = scmp.ne.s32.totalorder %s1402_s28, %s1398_s27 }
   0x8   : > { %p178_p1 = scmp.eq.s32.totalorder %s177_s10, 0  ;;  %p191_p2 = scmp.eq.s32.totalorder %s1476_s6, 1 }
   0x9   : > { %p196_p3 = scmp.ne.s32.totalorder %s1398_s27, %s1394_s26  ;;  %p197_p4 = scmp.eq.s32.totalorder %s1247_s30, 1 }
   0xa   : > { %s1491_s11 = scalar_select %p178_p1, %s1402_s28, %s180_s9  }
   0xb   : > { %p1493_p5 = por %p191_p2, %p190_p0  ;;  %p1497_p6 = por %p197_p4, %p196_p3 }
   0xc   : > { %p1250_p7 = scmp.ge.s32.totalorder %s1406_s29, 1  ;;  %p241_p8 = scmp.lt.s32.totalorder %s1406_s29, 3 }
   0xe   : > { %p242_p9 = pnand %p1250_p7, %p241_p8 }
   0xf   : > { %v538_v0 = vld [vmem:[%s1782_s2] sm:$0xf] (!%p242_p9)  ;;  %v1408_v2 = vmov (!%p242_p9), 0   ;;  %v539_v3 = vld [vmem:[%s1782_s2 + $0x4] sm:$0xf] (!%p242_p9)  ;;  %v803_v33 = vld [vmem:[%s1784_s4 + $0x8] sm:$0xff] (!%p242_p9)  ;;  %v282_v49 = vlaneseq (!%p242_p9) }
  0x10   : > { %245 = sbr.rel (%p242_p9) target bundleno = 494 (0x1ee), region = 48  ;;  %v294_v1 = vld [vmem:[%s1781_s1] sm:$0xf] (!%p242_p9)  ;;  %1339 = vset.pattern.permute.xlu1 (!%p242_p9), %v1408_v2  ;;  %1338 = vset.pattern.permute.xlu0 (!%p242_p9), %v1408_v2  ;;  %v295_v4 = vld [vmem:[%s1781_s1 + $0x4] sm:$0xf] (!%p242_p9)  ;;  %v805_v35 = vld [vmem:[%s1784_s4 + $0x18] sm:$0xff] (!%p242_p9) }
  0x11   : > { %556 = vperm.xlu1 (!%p242_p9), %1339, %v538_v0   ;;  %312 = vperm.xlu0 (!%p242_p9), %1338, %v294_v1   ;;  %v297_v5 = vld [vmem:[%s1781_s1 + $0xc] sm:$0xf] (!%p242_p9)  ;;  %v296_v6 = vld [vmem:[%s1781_s1 + $0x8] sm:$0xf] (!%p242_p9)  ;;  %v299_v9 = vld [vmem:[%s1781_s1 + $0x14] sm:$0xf] (!%p242_p9) }
  0x12   : > { %986 = vmatprep.mubr.bf16.mxu0 (!%p242_p9), %v1408_v2  ;;  %1006 = vmatprep.mubr.bf16.mxu1 (!%p242_p9), %v1408_v2  ;;  %v541_v7 = vld [vmem:[%s1782_s2 + $0xc] sm:$0xf] (!%p242_p9)  ;;  %v540_v8 = vld [vmem:[%s1782_s2 + $0x8] sm:$0xf] (!%p242_p9)  ;;  %v298_v10 = vld [vmem:[%s1781_s1 + $0x10] sm:$0xf] (!%p242_p9) }
  0x13   : > { %v543_v11 = vld [vmem:[%s1782_s2 + $0x14] sm:$0xf] (!%p242_p9)  ;;  %v542_v12 = vld [vmem:[%s1782_s2 + $0x10] sm:$0xf] (!%p242_p9)  ;;  %v301_v13 = vld [vmem:[%s1781_s1 + $0x1c] sm:$0xf] (!%p242_p9) }
  0x14   : > { %v300_v14 = vld [vmem:[%s1781_s1 + $0x18] sm:$0xf] (!%p242_p9)  ;;  %v545_v15 = vld [vmem:[%s1782_s2 + $0x1c] sm:$0xf] (!%p242_p9)  ;;  %v303_v17 = vld [vmem:[%s1781_s1 + $0x24] sm:$0xf] (!%p242_p9) }
  0x15   : > { %568 = vperm.xlu1 (!%p242_p9), %1339, %v539_v3   ;;  %324 = vperm.xlu0 (!%p242_p9), %1338, %v295_v4   ;;  %v544_v16 = vld [vmem:[%s1782_s2 + $0x18] sm:$0xf] (!%p242_p9)  ;;  %v302_v18 = vld [vmem:[%s1781_s1 + $0x20] sm:$0xf] (!%p242_p9)  ;;  %v547_v19 = vld [vmem:[%s1782_s2 + $0x24] sm:$0xf] (!%p242_p9) }
  0x16   : > { %v546_v20 = vld [vmem:[%s1782_s2 + $0x20] sm:$0xf] (!%p242_p9)  ;;  %v305_v21 = vld [vmem:[%s1781_s1 + $0x2c] sm:$0xf] (!%p242_p9)  ;;  %v304_v22 = vld [vmem:[%s1781_s1 + $0x28] sm:$0xf] (!%p242_p9) }
  0x17   : > { %v549_v23 = vld [vmem:[%s1782_s2 + $0x2c] sm:$0xf]  ;;  %v548_v24 = vld [vmem:[%s1782_s2 + $0x28] sm:$0xf]  ;;  %v307_v25 = vld [vmem:[%s1781_s1 + $0x34] sm:$0xf] }
  0x18   : > { %v306_v26 = vld [vmem:[%s1781_s1 + $0x30] sm:$0xf]  ;;  %v551_v27 = vld [vmem:[%s1782_s2 + $0x34] sm:$0xf]  ;;  %v309_v29 = vld [vmem:[%s1781_s1 + $0x3c] sm:$0xf] }
  0x19   : > { %348 = vperm.xlu1 %1339, %v297_v5   ;;  %336 = vperm.xlu0 %1338, %v296_v6   ;;  %v550_v28 = vld [vmem:[%s1782_s2 + $0x30] sm:$0xf]  ;;  %v308_v30 = vld [vmem:[%s1781_s1 + $0x38] sm:$0xf]  ;;  %v553_v31 = vld [vmem:[%s1782_s2 + $0x3c] sm:$0xf] }
  0x1a   : > { %v552_v32 = vld [vmem:[%s1782_s2 + $0x38] sm:$0xf]  ;;  %v802_v34 = vld [vmem:[%s1784_s4] sm:$0xff]  ;;  %v804_v36 = vld [vmem:[%s1784_s4 + $0x10] sm:$0xff]  ;;  %s1252_s20 = sshll.u32 %s1476_s6, 1  ;;  %v1653_v50 = vshrl.u32 %v282_v49, 7 }
  0x1b   : > { %v1059_v37 = vld [vmem:[%s1785_s5] sm:$0xff]  ;;  %v807_v39 = vld [vmem:[%s1784_s4 + $0x28] sm:$0xff]  ;;  %v808_v41 = vld [vmem:[%s1784_s4 + $0x30] sm:$0xff]  ;;  %p273_p10 = scmp.lt.s32.totalorder %s1252_s20, 3  ;;  %v1409_v58 = vmov 839922192  }
  0x1c   : > { %v806_v38 = vld [vmem:[%s1784_s4 + $0x20] sm:$0xff]  ;;  %v1060_v40 = vld [vmem:[%s1785_s5 + $0x8] sm:$0xff]  ;;  %v1061_v42 = vld [vmem:[%s1785_s5 + $0x10] sm:$0xff]  ;;  %v284_v51 = vsub.s32 0, %v1653_v50  ;;  %v288_v52 = vsub.s32 1, %v1653_v50  ;;  %v316_v59 = vunpack.c.l.s4 %v1409_v58  ;;  %s1149_s17 = sld [smem:[#allocation2]] }
  0x1d   : > { %592 = vperm.xlu1 %1339, %v541_v7   ;;  %580 = vperm.xlu0 %1338, %v540_v8   ;;  %v809_v43 = vld [vmem:[%s1784_s4 + $0x38] sm:$0xff]  ;;  %v1064_v45 = vld [vmem:[%s1785_s5 + $0x28] sm:$0xff]  ;;  %v1063_v46 = vld [vmem:[%s1785_s5 + $0x20] sm:$0xff]  ;;  %s1795_s20 = smov (!%p273_p10, %s1252_s20), 3  ;;  %s269_s18 = sand.u32 1, %s1398_s27   ;;  %vm1173_vm0 = vcmp.lt.s32.totalorder %v282_v49, 256 }
  0x1e   : > { %v1062_v44 = vld [vmem:[%s1785_s5 + $0x18] sm:$0xff]  ;;  %v1065_v48 = vld [vmem:[%s1785_s5 + $0x30] sm:$0xff]  ;;  %s275_s23 = scalar_lea.vmem %s1780_s0, %s1795_s20  ;;  %v317_v62 = vunpack.c.0.s8 %v316_v59  ;;  %s1251_s19 = sshll.u32 %s269_s18, 1 }
  0x1f   : > { %v1066_v47 = vld [vmem:[%s1785_s5 + $0x38] sm:$0xff]  ;;  %v280_v53 = vld [vmem:[%s275_s23] sm:$0x3]  ;;  %s1279_s20 = sshll.u32 %s1476_s6, 5  ;;  %s271_s21 = scalar_lea.vmem [#allocation3], %s1251_s19 }
  0x20   : > { %v285_v54 = vrot.slane %v280_v53, %v284_v51  ;;  %v289_v55 = vrot.slane %v280_v53, %v288_v52  ;;  %v1661_v1 = vsub.s32 %v317_v62, %v1653_v50  ;;  %s1191_s22 = sshll.u32 %s271_s21, 4  ;;  %s1738_s25 = scalar_lea.hbm %s1787_s7, %s1279_s20  ;;  %s1740_s22 = int_to_ptr.vmem [resolvable:$true] %s1191_s22 }
  0x21   : > { %372 = vperm.xlu1 %1339, %v299_v9   ;;  %360 = vperm.xlu0 %1338, %v298_v10   ;;  %s1177_s30 = scalar_lea.sflag [#allocation4], %s269_s18  ;;  %s1344_s9 = scalar_lea.vmem %s1740_s22, 32 }
  0x22   : > { %v292_v56 = vpack.c.bf16 %v285_v54, %v285_v54  ;;  %v293_v57 = vpack.c.bf16 %v289_v55, %v289_v55  ;;  %p1345_p11 = scmp.ne.s32.totalorder %s1740_s22, %s1344_s9  ;;  %s1411_s6 = smov [#allocation3]  }
  0x23   : > { %s1348_s10 = sshll.u32 %s1411_s6, 4  ;;  %s1349_s10 = int_to_ptr.vmem [resolvable:$false] %s1348_s10 }
  0x24   : > { %v503_v60 = vpack.i.b16 %v292_v56, %v292_v56  ;;  %v510_v61 = vpack.i.b16 %v293_v57, %v293_v57  ;;  %p1346_p12 = pnand %p1345_p11, %p1493_p5  ;;  %s1350_s14 = scalar_lea.vmem %s1349_s10, 64 }
  0x25   : > { %616 = vperm.xlu1 %1339, %v543_v11   ;;  %604 = vperm.xlu0 %1338, %v542_v12   ;;  %p1351_p0 = scmp.lt.s32.totalorder %s1740_s22, %s1349_s10  ;;  %p1352_p1 = scmp.lt.s32.totalorder %s1350_s14, %s1344_s9 }
  0x26   : > { %v508_v63 = vrot.slane %v503_v60, %v284_v51  ;;  %v515_v0 = vrot.slane %v510_v61, %v284_v51  ;;  %p1347_p13 = pneg %p1346_p12 }
  0x27   : > { %p1353_p2 = por %p1352_p1, %p1351_p0 }
  0x28   : > { %v1663_v3 = vcombine.low %v508_v63, %v515_v0 }
  0x29   : > { %396 = vperm.xlu1 %1339, %v301_v13   ;;  %384 = vperm.xlu0 %1338, %v300_v14   ;;  %p1354_p3 = pnand %p1353_p2, %p1347_p13 }
  0x2d   : > { %640 = vperm.xlu1 %1339, %v545_v15   ;;  %628 = vperm.xlu0 %1338, %v544_v16  }
  0x31   : > { %420 = vperm.xlu1 %1339, %v303_v17   ;;  %408 = vperm.xlu0 %1338, %v302_v18  }
  0x35   : > { %664 = vperm.xlu1 %1339, %v547_v19   ;;  %652 = vperm.xlu0 %1338, %v546_v20  }
  0x39   : > { %444 = vperm.xlu1 %1339, %v305_v21   ;;  %432 = vperm.xlu0 %1338, %v304_v22  }
  0x3d   : > { %688 = vperm.xlu1 %1339, %v549_v23   ;;  %676 = vperm.xlu0 %1338, %v548_v24  }
  0x41   : > { %468 = vperm.xlu1 %1339, %v307_v25   ;;  %456 = vperm.xlu0 %1338, %v306_v26  }
  0x45   : > { %712 = vperm.xlu1 %1339, %v551_v27   ;;  %700 = vperm.xlu0 %1338, %v550_v28  }
  0x49   : > { %492 = vperm.xlu1 %1339, %v309_v29   ;;  %480 = vperm.xlu0 %1338, %v308_v30  }
  0x4d   : > { %736 = vperm.xlu1 %1339, %v553_v31   ;;  %724 = vperm.xlu0 %1338, %v552_v32  }
  0x51   : > { %817 = vperm.xlu1 %1339, %v803_v33   ;;  %812 = vperm.xlu0 %1338, %v802_v34  }
  0x55   : > { %827 = vperm.xlu1 %1339, %v805_v35   ;;  %822 = vperm.xlu0 %1338, %v804_v36  }
  0x59   : > { %1069 = vperm.xlu1 %1339, %v1059_v37   ;;  %832 = vperm.xlu0 %1338, %v806_v38  }
  0x5d   : > { %837 = vperm.xlu1 %1339, %v807_v39   ;;  %1074 = vperm.xlu0 %1338, %v1060_v40  }
  0x61   : > { %842 = vperm.xlu1 %1339, %v808_v41   ;;  %1079 = vperm.xlu0 %1338, %v1061_v42  }
  0x65   : > { %847 = vperm.xlu1 %1339, %v809_v43   ;;  %1084 = vperm.xlu0 %1338, %v1062_v44  }
  0x69   : > { %1094 = vperm.xlu1 %1339, %v1064_v45   ;;  %1089 = vperm.xlu0 %1338, %v1063_v46  }
  0x6d   : > { %1104 = vperm.xlu1 %1339, %v1066_v47   ;;  %1099 = vperm.xlu0 %1338, %v1065_v48  }
  0x90   : > { %v557_v4 = vpop.permute.xlu1 %556  ;;  %v313_v5 = vpop.permute.xlu0 %312 }
  0x91   : > { %v321_v6 = vrot.slane %v313_v5, %v1661_v1  ;;  %v565_v7 = vrot.slane %v557_v4, %v1661_v1 }
  0x93   : > { %v522_v8 = vmul.bf16 %v1663_v3, %v321_v6 }
  0x94   : > { %v569_v9 = vpop.permute.xlu1 %568  ;;  %v325_v10 = vpop.permute.xlu0 %324 }
  0x95   : > { %v746_v11 = vadd.bf16 %v565_v7, %v522_v8  ;;  %v333_v12 = vrot.slane %v325_v10, %v1661_v1  ;;  %v577_v13 = vrot.slane %v569_v9, %v1661_v1 }
  0x97   : > { %v523_v14 = vmul.bf16 %v1663_v3, %v333_v12  ;;  %v762_v17 = vmul.bf16 1045249613, %v746_v11 }
  0x98   : > { %v349_v15 = vpop.permute.xlu1 %348  ;;  %v337_v16 = vpop.permute.xlu0 %336 }
  0x99   : > { %v747_v18 = vadd.bf16 %v577_v13, %v523_v14  ;;  %v357_v19 = vrot.slane %v349_v15, %v1661_v1  ;;  %v345_v20 = vrot.slane %v337_v16, %v1661_v1  ;;  %v778_v25 = vmax.bf16 %v762_v17, %v746_v11 }
  0x9b   : > { %v763_v21 = vmul.bf16 1045249613, %v747_v18  ;;  %v525_v22 = vmul.bf16 %v1663_v3, %v357_v19  ;;  %v524_v26 = vmul.bf16 %v1663_v3, %v345_v20 }
  0x9c   : > { %v593_v23 = vpop.permute.xlu1 %592  ;;  %v581_v24 = vpop.permute.xlu0 %580 }
  0x9d   : > { %v601_v27 = vrot.slane %v593_v23, %v1661_v1  ;;  %v589_v28 = vrot.slane %v581_v24, %v1661_v1  ;;  %v779_v29 = vmax.bf16 %v763_v21, %v747_v18 }
  0x9f   : > { %v749_v30 = vadd.bf16 %v601_v27, %v525_v22  ;;  %v748_v31 = vadd.bf16 %v589_v28, %v524_v26  ;;  %v1259_v32 = vcombine.high %v778_v25, %v779_v29  ;;  %v1258_v33 = vcombine.low %v778_v25, %v779_v29 }
  0xa0   : > { %v373_v34 = vpop.permute.xlu1 %372  ;;  %v361_v35 = vpop.permute.xlu0 %360 }
  0xa1   : > { %v765_v36 = vmul.bf16 1045249613, %v749_v30  ;;  %v764_v37 = vmul.bf16 1045249613, %v748_v31  ;;  %v381_v38 = vrot.slane %v373_v34, %v1661_v1  ;;  %v369_v39 = vrot.slane %v361_v35, %v1661_v1  ;;  %954 = vmatprep.subr.bf16.mxu0 %v1259_v32  ;;  %1280 = vmatprep.subr.bf16.mxu1 %v1259_v32 }
  0xa2   : > { %955 = vmatpush1.bf16.msra.mxu0 %v1258_v33  ;;  %1288 = vmatpush1.bf16.msra.mxu1 %v1258_v33 }
  0xa3   : > { %v781_v40 = vmax.bf16 %v765_v36, %v749_v30  ;;  %v780_v41 = vmax.bf16 %v764_v37, %v748_v31  ;;  %v527_v42 = vmul.bf16 %v1663_v3, %v381_v38  ;;  %v526_v43 = vmul.bf16 %v1663_v3, %v369_v39 }
  0xa4   : > { %v617_v44 = vpop.permute.xlu1 %616  ;;  %v605_v45 = vpop.permute.xlu0 %604 }
  0xa5   : > { %v625_v46 = vrot.slane %v617_v44, %v1661_v1  ;;  %v613_v47 = vrot.slane %v605_v45, %v1661_v1  ;;  %v1261_v48 = vcombine.high %v780_v41, %v781_v40  ;;  %v1260_v51 = vcombine.low %v780_v41, %v781_v40 }
  0xa7   : > { %v751_v52 = vadd.bf16 %v625_v46, %v527_v42  ;;  %v750_v53 = vadd.bf16 %v613_v47, %v526_v43  ;;  %956 = vmatprep.subr.bf16.mxu0 %v1261_v48  ;;  %1281 = vmatprep.subr.bf16.mxu1 %v1261_v48 }
  0xa8   : > { %v397_v54 = vpop.permute.xlu1 %396  ;;  %v385_v55 = vpop.permute.xlu0 %384  ;;  %957 = vmatpush1.bf16.msra.mxu0 %v1260_v51  ;;  %1289 = vmatpush1.bf16.msra.mxu1 %v1260_v51 }
  0xa9   : > { %v767_v56 = vmul.bf16 1045249613, %v751_v52  ;;  %v766_v57 = vmul.bf16 1045249613, %v750_v53  ;;  %v405_v58 = vrot.slane %v397_v54, %v1661_v1  ;;  %v393_v59 = vrot.slane %v385_v55, %v1661_v1 }
  0xab   : > { %v783_v60 = vmax.bf16 %v767_v56, %v751_v52  ;;  %v782_v61 = vmax.bf16 %v766_v57, %v750_v53  ;;  %v529_v62 = vmul.bf16 %v1663_v3, %v405_v58  ;;  %v528_v63 = vmul.bf16 %v1663_v3, %v393_v59 }
  0xac   : > { %v641_v0 = vpop.permute.xlu1 %640  ;;  %v629_v4 = vpop.permute.xlu0 %628 }
  0xad   : > { %v649_v5 = vrot.slane %v641_v0, %v1661_v1  ;;  %v637_v6 = vrot.slane %v629_v4, %v1661_v1  ;;  %v1263_v7 = vcombine.high %v782_v61, %v783_v60  ;;  %v1262_v8 = vcombine.low %v782_v61, %v783_v60 }
  0xaf   : > { %v753_v9 = vadd.bf16 %v649_v5, %v529_v62  ;;  %v752_v10 = vadd.bf16 %v637_v6, %v528_v63  ;;  %958 = vmatprep.subr.bf16.mxu0 %v1263_v7  ;;  %1282 = vmatprep.subr.bf16.mxu1 %v1263_v7 }
  0xb0   : > { %v421_v11 = vpop.permute.xlu1 %420  ;;  %v409_v12 = vpop.permute.xlu0 %408  ;;  %959 = vmatpush1.bf16.msra.mxu0 %v1262_v8  ;;  %1290 = vmatpush1.bf16.msra.mxu1 %v1262_v8 }
  0xb1   : > { %v769_v13 = vmul.bf16 1045249613, %v753_v9  ;;  %v768_v14 = vmul.bf16 1045249613, %v752_v10  ;;  %v429_v15 = vrot.slane %v421_v11, %v1661_v1  ;;  %v417_v16 = vrot.slane %v409_v12, %v1661_v1 }
  0xb3   : > { %v785_v17 = vmax.bf16 %v769_v13, %v753_v9  ;;  %v784_v18 = vmax.bf16 %v768_v14, %v752_v10  ;;  %v531_v19 = vmul.bf16 %v1663_v3, %v429_v15  ;;  %v530_v20 = vmul.bf16 %v1663_v3, %v417_v16 }
  0xb4   : > { %v665_v21 = vpop.permute.xlu1 %664  ;;  %v653_v22 = vpop.permute.xlu0 %652 }
  0xb5   : > { %v673_v23 = vrot.slane %v665_v21, %v1661_v1  ;;  %v661_v24 = vrot.slane %v653_v22, %v1661_v1  ;;  %v1265_v25 = vcombine.high %v784_v18, %v785_v17  ;;  %v1264_v26 = vcombine.low %v784_v18, %v785_v17 }
  0xb7   : > { %v755_v27 = vadd.bf16 %v673_v23, %v531_v19  ;;  %v754_v28 = vadd.bf16 %v661_v24, %v530_v20  ;;  %960 = vmatprep.subr.bf16.mxu0 %v1265_v25  ;;  %1283 = vmatprep.subr.bf16.mxu1 %v1265_v25 }
  0xb8   : > { %v445_v29 = vpop.permute.xlu1 %444  ;;  %v433_v30 = vpop.permute.xlu0 %432  ;;  %961 = vmatpush1.bf16.msra.mxu0 %v1264_v26  ;;  %1291 = vmatpush1.bf16.msra.mxu1 %v1264_v26 }
  0xb9   : > { %v771_v31 = vmul.bf16 1045249613, %v755_v27  ;;  %v770_v32 = vmul.bf16 1045249613, %v754_v28  ;;  %v453_v33 = vrot.slane %v445_v29, %v1661_v1  ;;  %v441_v34 = vrot.slane %v433_v30, %v1661_v1  ;;  %v1341_v29 = vld [vmem:[%s1783_s3 + $0x10] sm:$0xff]   ;;  %v1342_v30 = vld [vmem:[%s1783_s3 + $0x8] sm:$0xff]  }
  0xbb   : > { %v787_v35 = vmax.bf16 %v771_v31, %v755_v27  ;;  %v786_v36 = vmax.bf16 %v770_v32, %v754_v28  ;;  %v533_v37 = vmul.bf16 %v1663_v3, %v453_v33  ;;  %v532_v38 = vmul.bf16 %v1663_v3, %v441_v34  ;;  %v1343_v31 = vld [vmem:[%s1783_s3 + $0x18] sm:$0xff]  }
  0xbc   : > { %v689_v39 = vpop.permute.xlu1 %688  ;;  %v677_v40 = vpop.permute.xlu0 %676 }
  0xbd   : > { %v697_v41 = vrot.slane %v689_v39, %v1661_v1  ;;  %v685_v42 = vrot.slane %v677_v40, %v1661_v1  ;;  %v1267_v43 = vcombine.high %v786_v36, %v787_v35  ;;  %v1266_v44 = vcombine.low %v786_v36, %v787_v35 }
  0xbf   : > { %v757_v45 = vadd.bf16 %v697_v41, %v533_v37  ;;  %v756_v46 = vadd.bf16 %v685_v42, %v532_v38  ;;  %962 = vmatprep.subr.bf16.mxu0 %v1267_v43  ;;  %1284 = vmatprep.subr.bf16.mxu1 %v1267_v43 }
  0xc0   : > { %v469_v47 = vpop.permute.xlu1 %468  ;;  %v457_v48 = vpop.permute.xlu0 %456  ;;  %963 = vmatpush1.bf16.msra.mxu0 %v1266_v44  ;;  %1292 = vmatpush1.bf16.msra.mxu1 %v1266_v44 }
  0xc1   : > { %v773_v51 = vmul.bf16 1045249613, %v757_v45  ;;  %v772_v52 = vmul.bf16 1045249613, %v756_v46  ;;  %v477_v53 = vrot.slane %v469_v47, %v1661_v1  ;;  %v465_v54 = vrot.slane %v457_v48, %v1661_v1 }
  0xc3   : > { %v789_v55 = vmax.bf16 %v773_v51, %v757_v45  ;;  %v788_v56 = vmax.bf16 %v772_v52, %v756_v46  ;;  %v535_v57 = vmul.bf16 %v1663_v3, %v477_v53  ;;  %v534_v58 = vmul.bf16 %v1663_v3, %v465_v54 }
  0xc4   : > { %v713_v59 = vpop.permute.xlu1 %712  ;;  %v701_v60 = vpop.permute.xlu0 %700 }
  0xc5   : > { %v721_v61 = vrot.slane %v713_v59, %v1661_v1  ;;  %v709_v62 = vrot.slane %v701_v60, %v1661_v1  ;;  %v1269_v63 = vcombine.high %v788_v56, %v789_v55  ;;  %v1268_v0 = vcombine.low %v788_v56, %v789_v55 }
  0xc7   : > { %v759_v4 = vadd.bf16 %v721_v61, %v535_v57  ;;  %v758_v5 = vadd.bf16 %v709_v62, %v534_v58  ;;  %964 = vmatprep.subr.bf16.mxu0 %v1269_v63  ;;  %1285 = vmatprep.subr.bf16.mxu1 %v1269_v63 }
  0xc8   : > { %v493_v6 = vpop.permute.xlu1 %492  ;;  %v481_v7 = vpop.permute.xlu0 %480  ;;  %965 = vmatpush1.bf16.msra.mxu0 %v1268_v0  ;;  %1293 = vmatpush1.bf16.msra.mxu1 %v1268_v0 }
  0xc9   : > { %v775_v8 = vmul.bf16 1045249613, %v759_v4  ;;  %v774_v9 = vmul.bf16 1045249613, %v758_v5  ;;  %v501_v10 = vrot.slane %v493_v6, %v1661_v1  ;;  %v489_v11 = vrot.slane %v481_v7, %v1661_v1 }
  0xcb   : > { %v791_v12 = vmax.bf16 %v775_v8, %v759_v4  ;;  %v790_v13 = vmax.bf16 %v774_v9, %v758_v5  ;;  %v537_v14 = vmul.bf16 %v1663_v3, %v501_v10  ;;  %v536_v15 = vmul.bf16 %v1663_v3, %v489_v11 }
  0xcc   : > { %v737_v16 = vpop.permute.xlu1 %736  ;;  %v725_v17 = vpop.permute.xlu0 %724 }
  0xcd   : > { %v745_v18 = vrot.slane %v737_v16, %v1661_v1  ;;  %v733_v19 = vrot.slane %v725_v17, %v1661_v1  ;;  %v1271_v20 = vcombine.high %v790_v13, %v791_v12  ;;  %v1270_v21 = vcombine.low %v790_v13, %v791_v12  ;;  %v1340_v1 = vld [vmem:[%s1783_s3] sm:$0xff]  }
  0xcf   : > { %v761_v22 = vadd.bf16 %v745_v18, %v537_v14  ;;  %v760_v23 = vadd.bf16 %v733_v19, %v536_v15  ;;  %966 = vmatprep.subr.bf16.mxu0 %v1271_v20  ;;  %1286 = vmatprep.subr.bf16.mxu1 %v1271_v20 }
  0xd0   : > { %967 = vmatpush1.bf16.msra.mxu0 %v1270_v21  ;;  %1294 = vmatpush1.bf16.msra.mxu1 %v1270_v21  ;;  %v813_v32 = vpop.permute.xlu0 %812  ;;  %v818_v33 = vpop.permute.xlu1 %817 }
  0xd1   : > { %v777_v24 = vmul.bf16 1045249613, %v761_v22  ;;  %v776_v25 = vmul.bf16 1045249613, %v760_v23 }
  0xd3   : > { %v793_v26 = vmax.bf16 %v777_v24, %v761_v22  ;;  %v792_v27 = vmax.bf16 %v776_v25, %v760_v23 }
  0xd4   : > { %v823_v34 = vpop.permute.xlu0 %822  ;;  %v828_v35 = vpop.permute.xlu1 %827 }
  0xd5   : > { %v1273_v28 = vcombine.high %v792_v27, %v793_v26  ;;  %v1272_v3 = vcombine.low %v792_v27, %v793_v26 }
  0xd7   : > { %968 = vmatprep.subr.bf16.mxu0 %v1273_v28  ;;  %1287 = vmatprep.subr.bf16.mxu1 %v1273_v28 }
  0xd8   : > { %969 = vmatpush1.bf16.msra.mxu0 %v1272_v3  ;;  %1295 = vmatpush1.bf16.msra.mxu1 %v1272_v3  ;;  %v833_v36 = vpop.permute.xlu0 %832  ;;  %v1070_v37 = vpop.permute.xlu1 %1069 }
  0xdb   : > { %987 = vmatmul.mubr.bf16.vlgmr.msra.gmra.mrb[0].mxu0 %v1340_v1  ;;  %1007 = vmatmul.mubr.bf16.vlgmr.msra.gmra.mrb[0].mxu1 %v1341_v29 }
  0xdc   : > { %996 = vmatprep.mubr.bf16.mxu0 %v1408_v2  ;;  %1016 = vmatprep.mubr.bf16.mxu1 %v1408_v2  ;;  %v1075_v38 = vpop.permute.xlu0 %1074  ;;  %v838_v39 = vpop.permute.xlu1 %837 }
  0xe0   : > { %v1727_v40 = vpop.permute.xlu0 %1079  ;;  %v843_v59 = vpop.permute.xlu1 %842 }
  0xe3   : > { %997 = vmatmul.mubr.bf16.gmra.mrb[4].mxu0 %v1342_v30  ;;  %1017 = vmatmul.mubr.bf16.gmra.mrb[4].mxu1 %v1343_v31 }
  0xe4   : > { %v1085_v62 = vpop.permute.xlu0 %1084  ;;  %v848_v27 = vpop.permute.xlu1 %847 }
 0x1ae   : > { %v988_v2 = vpop.f32.mrb[0].mxu0  ;;  %v1008_v41 = vpop.f32.mrb[0].mxu1 }
 0x1af   : > { %v989_v42 = vadd.f32 %v988_v2, %v813_v32  ;;  %v990_v43 = vpop.f32.mrb[1].mxu0  ;;  %v1010_v44 = vpop.f32.mrb[1].mxu1  ;;  %v1009_v54 = vadd.f32 %v1008_v41, %v833_v36 }
 0x1b0   : > { %v991_v45 = vadd.f32 %v990_v43, %v813_v32  ;;  %v992_v46 = vpop.f32.mrb[2].mxu0  ;;  %v1012_v47 = vpop.f32.mrb[2].mxu1  ;;  %v1011_v63 = vadd.f32 %v1010_v44, %v833_v36 }
 0x1b1   : > { %v1027_v48 = vmul.f32 0.2, %v989_v42  ;;  %v993_v51 = vadd.f32 %v992_v46, %v818_v33  ;;  %v994_v52 = vpop.f32.mrb[3].mxu0  ;;  %v1014_v53 = vpop.f32.mrb[3].mxu1  ;;  %v1035_v4 = vmul.f32 0.2, %v1009_v54  ;;  %v1013_v5 = vadd.f32 %v1012_v47, %v838_v39 }
 0x1b2   : > { %v1028_v55 = vmul.f32 0.2, %v991_v45  ;;  %v995_v56 = vadd.f32 %v994_v52, %v818_v33  ;;  %v1015_v11 = vadd.f32 %v1014_v53, %v838_v39  ;;  %v1036_v21 = vmul.f32 0.2, %v1011_v63  ;;  %v1090_v43 = vpop.permute.xlu0 %1089 }
 0x1b3   : > { %v1043_v57 = vmax.f32 %v989_v42, %v1027_v48  ;;  %v1029_v58 = vmul.f32 0.2, %v993_v51  ;;  %v1037_v28 = vmul.f32 0.2, %v1013_v5  ;;  %v1051_v36 = vmax.f32 %v1009_v54, %v1035_v4 }
 0x1b4   : > { %v1044_v60 = vmax.f32 %v991_v45, %v1028_v55  ;;  %v1030_v61 = vmul.f32 0.2, %v995_v56  ;;  %v1052_v44 = vmax.f32 %v1011_v63, %v1036_v21 }
 0x1b5   : > { %v1045_v0 = vmax.f32 %v993_v51, %v1029_v58  ;;  %v1107_v9 = vmul.f32 %v1070_v37, %v1043_v57  ;;  %v1053_v45 = vmax.f32 %v1013_v5, %v1037_v28  ;;  %v1115_v54 = vmul.f32 %v1090_v43, %v1051_v36 }
 0x1b6   : > { %v1046_v6 = vmax.f32 %v995_v56, %v1030_v61  ;;  %v998_v7 = vpop.f32.mrb[4].mxu0  ;;  %v1018_v8 = vpop.f32.mrb[4].mxu1  ;;  %v1108_v15 = vmul.f32 %v1070_v37, %v1044_v60  ;;  %v1038_v37 = vmul.f32 0.2, %v1015_v11  ;;  %v1116_v61 = vmul.f32 %v1090_v43, %v1052_v44 }
 0x1b7   : > { %v1109_v10 = vmul.f32 %v1075_v38, %v1045_v0  ;;  %v999_v12 = vadd.f32 %v998_v7, %v823_v34  ;;  %v1000_v13 = vpop.f32.mrb[5].mxu0  ;;  %v1020_v14 = vpop.f32.mrb[5].mxu1  ;;  %v1019_v17 = vadd.f32 %v1018_v8, %v843_v59 }
 0x1b8   : > { %v1110_v16 = vmul.f32 %v1075_v38, %v1046_v6  ;;  %v1001_v18 = vadd.f32 %v1000_v13, %v823_v34  ;;  %v1002_v19 = vpop.f32.mrb[6].mxu0  ;;  %v1022_v20 = vpop.f32.mrb[6].mxu1  ;;  %v1021_v29 = vadd.f32 %v1020_v14, %v843_v59  ;;  %v1054_v55 = vmax.f32 %v1015_v11, %v1038_v37 }
 0x1b9   : > { %v1123_v22 = vadd.f32 %v1109_v10, %v1107_v9  ;;  %v1031_v23 = vmul.f32 0.2, %v999_v12  ;;  %v1003_v24 = vadd.f32 %v1002_v19, %v828_v35  ;;  %v1004_v25 = vpop.f32.mrb[7].mxu0  ;;  %v1024_v26 = vpop.f32.mrb[7].mxu1  ;;  %v1023_v32 = vadd.f32 %v1022_v20, %v848_v27 }
 0x1ba   : > { %v1136_v3 = vadd.f32 %v1110_v16, %v1108_v15  ;;  %v1032_v1 = vmul.f32 0.2, %v1001_v18  ;;  %v1005_v33 = vadd.f32 %v1004_v25, %v828_v35  ;;  %v1039_v34 = vmul.f32 0.2, %v1019_v17  ;;  %v1095_v35 = vpop.permute.xlu1 %1094 }
 0x1bb   : > { %v1047_v30 = vmax.f32 %v999_v12, %v1031_v23  ;;  %v1033_v31 = vmul.f32 0.2, %v1003_v24  ;;  %v1025_v42 = vadd.f32 %v1024_v26, %v848_v27  ;;  %v1040_v47 = vmul.f32 0.2, %v1021_v29 }
 0x1bc   : > { %v1048_v38 = vmax.f32 %v1001_v18, %v1032_v1  ;;  %v1034_v41 = vmul.f32 0.2, %v1005_v33  ;;  %v1041_v52 = vmul.f32 0.2, %v1023_v32  ;;  %v1055_v57 = vmax.f32 %v1019_v17, %v1039_v34 }
 0x1bd   : > { %v1111_v39 = vmul.f32 %v1727_v40, %v1047_v30  ;;  %v1049_v2 = vmax.f32 %v1003_v24, %v1033_v31  ;;  %v1042_v60 = vmul.f32 0.2, %v1025_v42  ;;  %v1117_v0 = vmul.f32 %v1095_v35, %v1053_v45 }
 0x1be   : > { %v1112_v46 = vmul.f32 %v1727_v40, %v1048_v38  ;;  %v1050_v53 = vmax.f32 %v1005_v33, %v1034_v41  ;;  %v1056_v4 = vmax.f32 %v1021_v29, %v1040_v47  ;;  %v1057_v5 = vmax.f32 %v1023_v32, %v1041_v52  ;;  %v1100_v40 = vpop.permute.xlu0 %1099  ;;  %v1105_v13 = vpop.permute.xlu1 %1104 }
 0x1bf   : > { %v1124_v48 = vadd.f32 %v1123_v22, %v1111_v39  ;;  %v1113_v51 = vmul.f32 %v1085_v62, %v1049_v2  ;;  %v1118_v7 = vmul.f32 %v1095_v35, %v1054_v55  ;;  %v1119_v8 = vmul.f32 %v1100_v40, %v1055_v57 }
 0x1c0   : > { %v1137_v56 = vadd.f32 %v1136_v3, %v1112_v46  ;;  %v1114_v59 = vmul.f32 %v1085_v62, %v1050_v53  ;;  %v1058_v12 = vmax.f32 %v1025_v42, %v1042_v60  ;;  %v1120_v14 = vmul.f32 %v1100_v40, %v1056_v4 }
 0x1c1   : > { %v1125_v58 = vadd.f32 %v1124_v48, %v1113_v51  ;;  %v1121_v11 = vmul.f32 %v1105_v13, %v1057_v5  ;;  %v1410_v27 = vmov 1966171168   ;;  %v1150_v29 = vstv %s1149_s17 }
 0x1c2   : > { %v1138_v6 = vadd.f32 %v1137_v56, %v1114_v59  ;;  %v1122_v62 = vmul.f32 %v1105_v13, %v1058_v12  ;;  %v1157_v28 = vunpack.c.l.s4 %v1410_v27 }
 0x1c3   : > { %v1126_v63 = vadd.f32 %v1125_v58, %v1115_v54 }
 0x1c4   : > { %v1139_v10 = vadd.f32 %v1138_v6, %v1116_v61  ;;  %v1158_v32 = vunpack.c.0.s8 %v1157_v28 }
 0x1c5   : > { %v1127_v9 = vadd.f32 %v1126_v63, %v1117_v0 }
 0x1c6   : > { %v1140_v16 = vadd.f32 %v1139_v10, %v1118_v7  ;;  %v1161_v34 = vsub.s32 %v1158_v32, %v1653_v50 }
 0x1c7   : > { %v1128_v15 = vadd.f32 %v1127_v9, %v1119_v8 }
 0x1c8   : > { %v1141_v18 = vadd.f32 %v1140_v16, %v1120_v14 }
 0x1c9   : > { %v1129_v17 = vadd.f32 %v1128_v15, %v1121_v11 }
 0x1ca   : > { %v1142_v20 = vadd.f32 %v1141_v18, %v1122_v62 }
 0x1cb   : > { %v1130_v19 = vrot.slane %v1129_v17, 4 }
 0x1cc   : > { %v1143_v22 = vrot.slane %v1142_v20, 4 }
 0x1cd   : > { %v1131_v21 = vadd.f32 %v1130_v19, %v1129_v17 }
 0x1ce   : > { %v1144_v24 = vadd.f32 %v1143_v22, %v1142_v20 }
 0x1cf   : > { %v1132_v23 = vrot.slane %v1131_v21, 2 }
 0x1d0   : > { %v1145_v26 = vrot.slane %v1144_v24, 2 }
 0x1d1   : > { %v1133_v25 = vadd.f32 %v1132_v23, %v1131_v21 }
 0x1d2   : > { %v1146_v1 = vadd.f32 %v1145_v26, %v1144_v24 }
 0x1d3   : > { %v1134_v3 = vrot.slane %v1133_v25, 1 }
 0x1d4   : > { %v1147_v31 = vrot.slane %v1146_v1, 1 }
 0x1d5   : > { %v1135_v30 = vadd.f32 %v1134_v3, %v1133_v25 }
 0x1d6   : > { %v1148_v33 = vadd.f32 %v1147_v31, %v1146_v1 }
 0x1d7   : > { %v1151_v36 = vadd.f32 %v1150_v29, %v1135_v30 }
 0x1d8   : > { %v1152_v37 = vadd.f32 %v1150_v29, %v1148_v33 }
 0x1da   : > { %v1155_v38 = vcombine.low %v1151_v36, %v1152_v37 }
 0x1dc   : > { %v1162_v39 = vrot.slane %v1155_v38, %v1161_v34 }
 0x1de   : > { %v1169_v2 = vrot.slane %v1162_v39, %v1161_v34 }
 0x1e0   : > { %1175 = vst.msk [vmem:[%s271_s21] sm:$0x3] %vm1173_vm0, %v1169_v2 }
 0x1e1   : > { %1357 = shalt.err (!%p1354_p3)
}
 0x1e2   : > { %s1358_s15 = scalar_lea.hbm %s1738_s25, 32  ;;  %s1362_s18 = scalar_lea.hbm %s1787_s7, 64 }
 0x1e3   : > { %p1359_p4 = scmp.ne.s32.totalorder %s1738_s25, %s1358_s15  ;;  %p1363_p9 = scmp.lt.u32.totalorder %s1738_s25, %s1787_s7 }
 0x1e4   : > { %p1364_p10 = scmp.lt.u32.totalorder %s1362_s18, %s1358_s15  ;;  %p1366_p12 = scmp.lt.u32.totalorder %s1358_s15, %s1738_s25 }
 0x1e5   : > { %p1360_p7 = pnand %p1359_p4, %p1493_p5 }
 0x1e6   : > { %p1365_p11 = por %p1364_p10, %p1363_p9 }
 0x1e7   : > { %p1361_p8 = pneg %p1360_p7 }
 0x1e8   : > { %p1367_p13 = por %p1366_p12, %p1365_p11 }
 0x1ea   : > { %p1368_p0 = pnand %p1367_p13, %p1361_p8 }
 0x1ec   : > { %1371 = shalt.err (!%p1368_p0)
}
 0x1ed   : > { %1296 = dma.vmem_to_hbm [thread:$0]  (%p1493_p5), %s1740_s22, 32, %s1738_s25, %s1177_s30  }
 0x1ee PF: > { %p1302_p1 = scmp.ge.s32.totalorder %s1406_s29, 2  ;;  %s1203_s21 = sand.u32 1, %s1394_s26  }
 0x1ef   : > { %s1204_s23 = scalar_lea.sflag [#allocation4], %s1203_s21 }
 0x1f0   : > { %p1299_p2 = pnand %p1302_p1, %p1497_p6 }
 0x1f2   : > { %1389 = dma.done.wait (!%p1299_p2), %s1204_s23, 32  }
 0x1f3   : > { %1391 = vsyncadd (!%p1299_p2), %s1204_s23, 4294967264  ;;  %p18_p3 = scmp.ge.s32.totalorder %s1480_s8, 4   ;;  %s1790_s26 = smov %s1398_s27 }
 0x1f4   : > { %s1791_s27 = smov %s1402_s28  ;;  %s1792_s28 = smov %s1491_s11 }
 0x1f5   : > { %s1793_s29 = smov %s1480_s8  ;;  %20 = sbr.rel (!%p18_p3) target bundleno = 5 (0x5), region = 83 }
 0x1fc   :  { %1209 = vsyncpa [#allocation4], 1 }
 0x1fd   :  { %1211 = vsyncpa [#allocation4 + $0x1], 1 }

</bundles_post_ra>
